<compile_context>
chip_gen: v6e
topology: v6e:2x2x1
jax: 0.10.0
libtpu: 0.0.40
codegen_flags: <defaults>
</compile_context>

<pallas_src>
import jax
import jax.numpy as jnp
from jax.experimental import pallas as pl
from jax.experimental.pallas import tpu as pltpu


def _round_up(a, m):
    return ((a + m - 1) // m) * m


def swiglu_kernel(x_ref, w12_ref, b12_ref, w3_ref, b3_ref, o_ref):
    # x_ref: (tm, D); w12: (D, 2H); b12: (1, 2H) f32; w3: (H, O); b3: (1, O) f32
    H = w3_ref.shape[0]

    # Fused gate+value projection: one (tm, D) @ (D, 2H) MXU matmul with f32
    # accumulation; operands stay in their native dtype (bf16-friendly).
    h12 = jnp.dot(x_ref[...], w12_ref[...],
                  preferred_element_type=jnp.float32) + b12_ref[...]

    h1 = h12[:, :H]   # w1 branch (through SiLU)
    h2 = h12[:, H:]   # w2 branch (gate)

    # SiLU(h1) * h2 in f32 on the VPU (sigmoid -> EUP slot, nearly free).
    hidden = (h1 * jax.nn.sigmoid(h1)) * h2

    # ffn_ln is Identity (subln=False default); drop=0.0 is Identity.
    out = jnp.dot(hidden.astype(w3_ref.dtype), w3_ref[...],
                  preferred_element_type=jnp.float32) + b3_ref[...]

    o_ref[...] = out.astype(o_ref.dtype)


def _swiglu_call(x2d, w12, b12, w3, b3r, *, tm, single_buffer_weights):
    Np, D = x2d.shape
    H2 = w12.shape[1]
    H, O = w3.shape

    if single_buffer_weights:
        # Weights/biases never change across the grid -> one VMEM copy is enough.
        const = dict(pipeline_mode=pl.Buffered(1))
    else:
        const = {}

    return pl.pallas_call(
        swiglu_kernel,
        out_shape=jax.ShapeDtypeStruct((Np, O), x2d.dtype),
        grid_spec=pltpu.PrefetchScalarGridSpec(
            num_scalar_prefetch=0,
            grid=(Np // tm,),
            in_specs=[
                pl.BlockSpec((tm, D), lambda i: (i, 0)),            # x row tile (double-buffered)
                pl.BlockSpec((D, H2), lambda i: (0, 0), **const),   # W1 | W2 fused
                pl.BlockSpec((1, H2), lambda i: (0, 0), **const),   # b1 | b2 fused
                pl.BlockSpec((H, O), lambda i: (0, 0), **const),    # W3
                pl.BlockSpec((1, O), lambda i: (0, 0), **const),    # b3
            ],
            out_specs=pl.BlockSpec((tm, O), lambda i: (i, 0)),
        ),
        compiler_params=pltpu.CompilerParams(
            dimension_semantics=("parallel",),        # row axis shards across TCs (v7x megacore)
            vmem_limit_bytes=64 * 1024 * 1024,
        ),
    )(x2d, w12, b12, w3, b3r)


def swiglu(x, w1, b1, w2, b2, w3, b3, *, tm=256, matmul_dtype=None):
    """SwiGLU forward.

    x:  (B, S, D)
    w1, w2: (D, H)  (stored transposed vs. torch.nn.Linear.weight)
    w3: (H, O)
    b1, b2: (H,);  b3: (O,)
    tm: rows (tokens) per grid step. 256 suits v6e/v7x; pass 128 on v5e.
    matmul_dtype: optional (e.g. jnp.bfloat16) — cast matmul operands in the
        wrapper for full-rate MXU; accumulation stays f32.
    """
    B, S, D = x.shape
    H = w1.shape[1]
    O = w3.shape[1]
    N = B * S

    # Clamp the row tile for small inputs; pad rows so the grid divides exactly.
    tm = max(8, min(tm, _round_up(N, 8)))
    Np = _round_up(N, tm)

    x2d = x.reshape(N, D)
    if Np != N:
        x2d = jnp.pad(x2d, ((0, Np - N), (0, 0)))

    # Fuse the two input projections into one weight / bias (one MXU push).
    w12 = jnp.concatenate([w1, w2], axis=1)                                   # (D, 2H)
    b12 = jnp.concatenate([b1, b2], axis=0).reshape(1, 2 * H).astype(jnp.float32)
    b3r = b3.reshape(1, O).astype(jnp.float32)

    if matmul_dtype is not None:
        x2d = x2d.astype(matmul_dtype)
        w12 = w12.astype(matmul_dtype)
        w3 = w3.astype(matmul_dtype)

    try:
        out2d = _swiglu_call(x2d, w12, b12, w3, b3r, tm=tm,
                             single_buffer_weights=True)
    except Exception:
        # Fallback for jax versions without BlockSpec pipeline_mode support
        # (weights get default double-buffering; correctness unchanged).
        out2d = _swiglu_call(x2d, w12, b12, w3, b3r, tm=tm,
                             single_buffer_weights=False)

    out2d = out2d.astype(x.dtype)
    return out2d[:N].reshape(B, S, O)


def swiglu_ref(x, w1, b1, w2, b2, w3, b3):
    h1 = jnp.einsum("bsd,dh->bsh", x, w1) + b1
    h2 = jnp.einsum("bsd,dh->bsh", x, w2) + b2
    hidden = (h1 * jax.nn.sigmoid(h1)) * h2
    return jnp.einsum("bsh,ho->bso", hidden, w3) + b3


if __name__ == "__main__":
    # Small shapes consistent with the module: (batch, seq, in_features)
    B, S, D = 2, 8, 32
    H = 64              # hidden_features
    O = D               # out_features defaults to in_features

    key = jax.random.PRNGKey(0)
    kx, k1, k2, k3, kb1, kb2, kb3 = jax.random.split(key, 7)

    x = jax.random.normal(kx, (B, S, D), dtype=jnp.float32)

    # Deterministic parameter init (Linear-style scaling); stored as (in, out).
    w1 = jax.random.normal(k1, (D, H), dtype=jnp.float32) / jnp.sqrt(D)
    w2 = jax.random.normal(k2, (D, H), dtype=jnp.float32) / jnp.sqrt(D)
    w3 = jax.random.normal(k3, (H, O), dtype=jnp.float32) / jnp.sqrt(H)
    b1 = jax.random.normal(kb1, (H,), dtype=jnp.float32) * 0.01
    b2 = jax.random.normal(kb2, (H,), dtype=jnp.float32) * 0.01
    b3 = jax.random.normal(kb3, (O,), dtype=jnp.float32) * 0.01

    out = swiglu(x, w1, b1, w2, b2, w3, b3)
    out = jax.block_until_ready(out)

    ref = swiglu_ref(x, w1, b1, w2, b2, w3, b3)
    assert out.shape == (B, S, O)
    assert jnp.allclose(out, ref, atol=1e-5, rtol=1e-5), "mismatch vs reference"

    print("KERNEL_OK")
</pallas_src>

<mosaic_0001>
module attributes {stable_mosaic.version = 11 : i64} {
  func.func @swiglu_kernel(%arg0: i32, %arg1: memref<16x32xf32, #tpu.memory_space<vmem>>, %arg2: memref<32x128xf32, #tpu.memory_space<vmem>>, %arg3: memref<1x128xf32, #tpu.memory_space<vmem>>, %arg4: memref<64x32xf32, #tpu.memory_space<vmem>>, %arg5: memref<1x32xf32, #tpu.memory_space<vmem>>, %arg6: memref<16x32xf32, #tpu.memory_space<vmem>>) attributes {dimension_semantics = [#tpu.dimension_semantics<parallel>], iteration_bounds = array<i64: 1>, scalar_prefetch = 0 : i64, scratch_operands = 0 : i64, tpu.core_type = #tpu.core_type<tc>, window_params = [{transform_indices = @transform_0, window_bounds = array<i64: 16, 32>}, {pipeline_mode = #tpu.pipeline_mode<synchronous>, transform_indices = @transform_1, window_bounds = array<i64: 32, 128>}, {pipeline_mode = #tpu.pipeline_mode<synchronous>, transform_indices = @transform_2, window_bounds = array<i64: 1, 128>}, {pipeline_mode = #tpu.pipeline_mode<synchronous>, transform_indices = @transform_3, window_bounds = array<i64: 64, 32>}, {pipeline_mode = #tpu.pipeline_mode<synchronous>, transform_indices = @transform_4, window_bounds = array<i64: 1, 32>}, {transform_indices = @transform_5, window_bounds = array<i64: 16, 32>}]} {
    %c0 = arith.constant 0 : index
    %c0_0 = arith.constant 0 : index
    %0 = vector.load %arg1[%c0, %c0_0] : memref<16x32xf32, #tpu.memory_space<vmem>>, vector<16x32xf32>
    %c0_1 = arith.constant 0 : index
    %c0_2 = arith.constant 0 : index
    %1 = vector.load %arg2[%c0_1, %c0_2] : memref<32x128xf32, #tpu.memory_space<vmem>>, vector<32x128xf32>
    %cst = arith.constant dense<0.000000e+00> : vector<16x128xf32>
    %2 = tpu.matmul %0, %1, %cst {dimension_numbers = #tpu.dot_dimension_numbers<[1], [0], [0], [1], [0, 0, 1, 1], [], []>} : vector<16x32xf32>, vector<32x128xf32>, vector<16x128xf32> -> vector<16x128xf32>
    %c0_3 = arith.constant 0 : index
    %c0_4 = arith.constant 0 : index
    %3 = vector.load %arg3[%c0_3, %c0_4] : memref<1x128xf32, #tpu.memory_space<vmem>>, vector<1x128xf32>
    %4 = vector.broadcast %3 : vector<1x128xf32> to vector<16x128xf32>
    %5 = arith.addf %2, %4 : vector<16x128xf32>
    %6 = vector.extract_strided_slice %5 {offsets = [0, 0], sizes = [16, 64], strides = [1, 1]} : vector<16x128xf32> to vector<16x64xf32>
    %7 = vector.extract_strided_slice %5 {offsets = [0, 64], sizes = [16, 64], strides = [1, 1]} : vector<16x128xf32> to vector<16x64xf32>
    %8 = arith.negf %6 : vector<16x64xf32>
    %9 = math.exp %8 : vector<16x64xf32>
    %cst_5 = arith.constant 1.000000e+00 : f32
    %10 = vector.broadcast %cst_5 : f32 to vector<16x64xf32>
    %11 = arith.addf %10, %9 : vector<16x64xf32>
    %12 = arith.divf %10, %11 : vector<16x64xf32>
    %13 = arith.mulf %6, %12 : vector<16x64xf32>
    %14 = arith.mulf %13, %7 : vector<16x64xf32>
    %c0_6 = arith.constant 0 : index
    %c0_7 = arith.constant 0 : index
    %15 = vector.load %arg4[%c0_6, %c0_7] : memref<64x32xf32, #tpu.memory_space<vmem>>, vector<64x32xf32>
    %cst_8 = arith.constant dense<0.000000e+00> : vector<16x32xf32>
    %16 = tpu.matmul %14, %15, %cst_8 {dimension_numbers = #tpu.dot_dimension_numbers<[1], [0], [0], [1], [0, 0, 1, 1], [], []>} : vector<16x64xf32>, vector<64x32xf32>, vector<16x32xf32> -> vector<16x32xf32>
    %c0_9 = arith.constant 0 : index
    %c0_10 = arith.constant 0 : index
    %17 = vector.load %arg5[%c0_9, %c0_10] : memref<1x32xf32, #tpu.memory_space<vmem>>, vector<1x32xf32>
    %18 = vector.broadcast %17 : vector<1x32xf32> to vector<16x32xf32>
    %19 = arith.addf %16, %18 : vector<16x32xf32>
    %c0_11 = arith.constant 0 : index
    %c0_12 = arith.constant 0 : index
    %20 = vector.load %arg6[%c0_11, %c0_12] : memref<16x32xf32, #tpu.memory_space<vmem>>, vector<16x32xf32>
    tpu.vector_store %arg6[%c0_11, %c0_12], %19 {strides = array<i32>} : memref<16x32xf32, #tpu.memory_space<vmem>>, vector<16x32xf32>,
    return
  }
  func.func @transform_0(%arg0: i32) -> (i32, i32) {
    %c0_i32 = arith.constant 0 : i32
    %c0_i32_0 = arith.constant 0 : i32
    return %arg0, %c0_i32 : i32, i32
  }
  func.func @transform_1(%arg0: i32) -> (i32, i32) {
    %c0_i32 = arith.constant 0 : i32
    %c0_i32_0 = arith.constant 0 : i32
    %c0_i32_1 = arith.constant 0 : i32
    return %c0_i32, %c0_i32_0 : i32, i32
  }
  func.func @transform_2(%arg0: i32) -> (i32, i32) {
    %c0_i32 = arith.constant 0 : i32
    %c0_i32_0 = arith.constant 0 : i32
    %c0_i32_1 = arith.constant 0 : i32
    return %c0_i32, %c0_i32_0 : i32, i32
  }
  func.func @transform_3(%arg0: i32) -> (i32, i32) {
    %c0_i32 = arith.constant 0 : i32
    %c0_i32_0 = arith.constant 0 : i32
    %c0_i32_1 = arith.constant 0 : i32
    return %c0_i32, %c0_i32_0 : i32, i32
  }
  func.func @transform_4(%arg0: i32) -> (i32, i32) {
    %c0_i32 = arith.constant 0 : i32
    %c0_i32_0 = arith.constant 0 : i32
    %c0_i32_1 = arith.constant 0 : i32
    return %c0_i32, %c0_i32_0 : i32, i32
  }
  func.func @transform_5(%arg0: i32) -> (i32, i32) {
    %c0_i32 = arith.constant 0 : i32
    %c0_i32_0 = arith.constant 0 : i32
    return %arg0, %c0_i32 : i32, i32
  }
}

module attributes {stable_mosaic.version = 11 : i64} {
  func.func @swiglu_kernel(%arg0: i32, %arg1: memref<16x32xf32, #tpu.memory_space<vmem>>, %arg2: memref<32x128xf32, #tpu.memory_space<vmem>>, %arg3: memref<1x128xf32, #tpu.memory_space<vmem>>, %arg4: memref<64x32xf32, #tpu.memory_space<vmem>>, %arg5: memref<1x32xf32, #tpu.memory_space<vmem>>, %arg6: memref<16x32xf32, #tpu.memory_space<vmem>>) attributes {dimension_semantics = [#tpu.dimension_semantics<parallel>], iteration_bounds = array<i64: 1>, scalar_prefetch = 0 : i64, scratch_operands = 0 : i64, tpu.core_type = #tpu.core_type<tc>, window_params = [{transform_indices = @transform_0, window_bounds = array<i64: 16, 32>}, {pipeline_mode = #tpu.pipeline_mode<synchronous>, transform_indices = @transform_1, window_bounds = array<i64: 32, 128>}, {pipeline_mode = #tpu.pipeline_mode<synchronous>, transform_indices = @transform_2, window_bounds = array<i64: 1, 128>}, {pipeline_mode = #tpu.pipeline_mode<synchronous>, transform_indices = @transform_3, window_bounds = array<i64: 64, 32>}, {pipeline_mode = #tpu.pipeline_mode<synchronous>, transform_indices = @transform_4, window_bounds = array<i64: 1, 32>}, {transform_indices = @transform_5, window_bounds = array<i64: 16, 32>}]} {
    %c0 = arith.constant 0 : index
    %c0_0 = arith.constant 0 : index
    %0 = vector.load %arg1[%c0, %c0_0] : memref<16x32xf32, #tpu.memory_space<vmem>>, vector<16x32xf32>
    %c0_1 = arith.constant 0 : index
    %c0_2 = arith.constant 0 : index
    %1 = vector.load %arg2[%c0_1, %c0_2] : memref<32x128xf32, #tpu.memory_space<vmem>>, vector<32x128xf32>
    %cst = arith.constant dense<0.000000e+00> : vector<16x128xf32>
    %2 = tpu.matmul %0, %1, %cst {dimension_numbers = #tpu.dot_dimension_numbers<[1], [0], [0], [1], [0, 0, 1, 1], [], []>} : vector<16x32xf32>, vector<32x128xf32>, vector<16x128xf32> -> vector<16x128xf32>
    %c0_3 = arith.constant 0 : index
    %c0_4 = arith.constant 0 : index
    %3 = vector.load %arg3[%c0_3, %c0_4] : memref<1x128xf32, #tpu.memory_space<vmem>>, vector<1x128xf32>
    %4 = vector.broadcast %3 : vector<1x128xf32> to vector<16x128xf32>
    %5 = arith.addf %2, %4 : vector<16x128xf32>
    %6 = vector.extract_strided_slice %5 {offsets = [0, 0], sizes = [16, 64], strides = [1, 1]} : vector<16x128xf32> to vector<16x64xf32>
    %7 = vector.extract_strided_slice %5 {offsets = [0, 64], sizes = [16, 64], strides = [1, 1]} : vector<16x128xf32> to vector<16x64xf32>
    %8 = arith.negf %6 : vector<16x64xf32>
    %9 = math.exp %8 : vector<16x64xf32>
    %cst_5 = arith.constant 1.000000e+00 : f32
    %10 = vector.broadcast %cst_5 : f32 to vector<16x64xf32>
    %11 = arith.addf %10, %9 : vector<16x64xf32>
    %12 = arith.divf %10, %11 : vector<16x64xf32>
    %13 = arith.mulf %6, %12 : vector<16x64xf32>
    %14 = arith.mulf %13, %7 : vector<16x64xf32>
    %c0_6 = arith.constant 0 : index
    %c0_7 = arith.constant 0 : index
    %15 = vector.load %arg4[%c0_6, %c0_7] : memref<64x32xf32, #tpu.memory_space<vmem>>, vector<64x32xf32>
    %cst_8 = arith.constant dense<0.000000e+00> : vector<16x32xf32>
    %16 = tpu.matmul %14, %15, %cst_8 {dimension_numbers = #tpu.dot_dimension_numbers<[1], [0], [0], [1], [0, 0, 1, 1], [], []>} : vector<16x64xf32>, vector<64x32xf32>, vector<16x32xf32> -> vector<16x32xf32>
    %c0_9 = arith.constant 0 : index
    %c0_10 = arith.constant 0 : index
    %17 = vector.load %arg5[%c0_9, %c0_10] : memref<1x32xf32, #tpu.memory_space<vmem>>, vector<1x32xf32>
    %18 = vector.broadcast %17 : vector<1x32xf32> to vector<16x32xf32>
    %19 = arith.addf %16, %18 : vector<16x32xf32>
    %c0_11 = arith.constant 0 : index
    %c0_12 = arith.constant 0 : index
    %20 = vector.load %arg6[%c0_11, %c0_12] : memref<16x32xf32, #tpu.memory_space<vmem>>, vector<16x32xf32>
    tpu.vector_store %arg6[%c0_11, %c0_12], %19 {strides = array<i32>} : memref<16x32xf32, #tpu.memory_space<vmem>>, vector<16x32xf32>,
    return
  }
  func.func @transform_0(%arg0: i32) -> (i32, i32) {
    %c0_i32 = arith.constant 0 : i32
    %c0_i32_0 = arith.constant 0 : i32
    return %arg0, %c0_i32 : i32, i32
  }
  func.func @transform_1(%arg0: i32) -> (i32, i32) {
    %c0_i32 = arith.constant 0 : i32
    %c0_i32_0 = arith.constant 0 : i32
    %c0_i32_1 = arith.constant 0 : i32
    return %c0_i32, %c0_i32_0 : i32, i32
  }
  func.func @transform_2(%arg0: i32) -> (i32, i32) {
    %c0_i32 = arith.constant 0 : i32
    %c0_i32_0 = arith.constant 0 : i32
    %c0_i32_1 = arith.constant 0 : i32
    return %c0_i32, %c0_i32_0 : i32, i32
  }
  func.func @transform_3(%arg0: i32) -> (i32, i32) {
    %c0_i32 = arith.constant 0 : i32
    %c0_i32_0 = arith.constant 0 : i32
    %c0_i32_1 = arith.constant 0 : i32
    return %c0_i32, %c0_i32_0 : i32, i32
  }
  func.func @transform_4(%arg0: i32) -> (i32, i32) {
    %c0_i32 = arith.constant 0 : i32
    %c0_i32_0 = arith.constant 0 : i32
    %c0_i32_1 = arith.constant 0 : i32
    return %c0_i32, %c0_i32_0 : i32, i32
  }
  func.func @transform_5(%arg0: i32) -> (i32, i32) {
    %c0_i32 = arith.constant 0 : i32
    %c0_i32_0 = arith.constant 0 : i32
    return %arg0, %c0_i32 : i32, i32
  }
}

</mosaic_0001>

<bundles_post_ra>
// kernel: tpu_custom_call.1
= control target key start
LH: loop header
LB: loop body
LE: loop exit
PB: predicated region body
PF: predicated region fallthrough
CT: control target
= control target key end

     0   :  { %vm34_vm0 = vcmask 261120   ;;  %s432_s0 = inlined_call_operand.vmem [shape: f32[16,32], index: 0, kind: input, shape index: {}]   ;;  %s433_s1 = inlined_call_operand.vmem [shape: f32[32,128], index: 1, kind: input, shape index: {}]   ;;  %s434_s2 = inlined_call_operand.vmem [shape: f32[1,128], index: 2, kind: input, shape index: {}]   ;;  %s435_s3 = inlined_call_operand.vmem [shape: f32[64,32], index: 3, kind: input, shape index: {}]   ;;  %s436_s4 = inlined_call_operand.vmem [shape: f32[1,32], index: 4, kind: input, shape index: {}]   ;;  %s437_s5 = inlined_call_operand.hbm [shape: f32[16,32], index: 5, kind: output, shape index: {}]  }
   0x1   :  { %v26_v0 = vld [vmem:[%s433_s1 + $0x18] sm:$0xff]  ;;  %v25_v1 = vld [vmem:[%s433_s1 + $0x10] sm:$0xff]  ;;  %v21_v2 = vld [vmem:[%s432_s0] sm:$0xff] }
   0x2   :  { %279 = vmatprep.subr.mxu0 %v26_v0  ;;  %v24_v3 = vld [vmem:[%s433_s1 + $0x8] sm:$0xff]  ;;  %287 = vmatprep.mubr.msk.f32.mxu0 %vm34_vm0, %v21_v2 }
   0x3   :  { %280 = vmatpush3.msra.mxu0 %v26_v0 }
   0x4   :  { %10 = vsyncpa [#allocation3], 0  ;;  %281 = vmatprep.subr.mxu0 %v25_v1  ;;  %v23_v4 = vld [vmem:[%s433_s1] sm:$0xff]  ;;  %v22_v5 = vld [vmem:[%s432_s0 + $0x8] sm:$0xff]  ;;  %s343_s21 = smov 64   ;;  %vm155_vm1 = vcmask 523264  }
   0x5   :  { %282 = vmatpush3.msra.mxu0 %v25_v1  ;;  %v147_v6 = vld [vmem:[%s435_s3 + $0x38] sm:$0xff]  ;;  %v146_v7 = vld [vmem:[%s435_s3 + $0x30] sm:$0xff]  ;;  %v145_v8 = vld [vmem:[%s435_s3 + $0x28] sm:$0xff]  ;;  %s344_s22 = smov [#allocation2]  }
   0x6   :  { %283 = vmatprep.subr.mxu0 %v24_v3  ;;  %290 = vmatprep.subr.mxu1 %v147_v6  ;;  %v144_v9 = vld [vmem:[%s435_s3 + $0x20] sm:$0xff]  ;;  %v143_v10 = vld [vmem:[%s435_s3 + $0x18] sm:$0xff]  ;;  %v142_v11 = vld [vmem:[%s435_s3 + $0x10] sm:$0xff]  ;;  %s244_s23 = sshll.u32 %s344_s22, 4  ;;  %s245_s23 = int_to_ptr.vmem [resolvable:$true] %s244_s23 }
   0x7   :  { %284 = vmatpush3.msra.mxu0 %v24_v3  ;;  %291 = vmatpush3.msra.mxu1 %v147_v6  ;;  %v141_v12 = vld [vmem:[%s435_s3 + $0x8] sm:$0xff]  ;;  %v140_v13 = vld [vmem:[%s435_s3] sm:$0xff]  ;;  %s321_s24 = scalar_lea.vmem %s245_s23, 256  ;;  %p326_p1 = scmp.lt.s32.totalorder %s245_s23, %s245_s23 }
   0x8   :  { %285 = vmatprep.subr.mxu0 %v23_v4  ;;  %292 = vmatprep.subr.mxu1 %v146_v7  ;;  %v255_v15 = vld [vmem:[%s434_s2] ss:$0 sm:$0xff]  ;;  %p322_p0 = scmp.ne.s32.totalorder %s245_s23, %s321_s24  ;;  %p327_p2 = scmp.lt.s32.totalorder %s321_s24, %s321_s24 }
   0x9   :  { %286 = vmatpush3.msra.mxu0 %v23_v4  ;;  %293 = vmatpush3.msra.mxu1 %v146_v7  ;;  %v260_v33 = vld [vmem:[%s436_s4] ss:$0 sm:$0xff] }
   0xa   :  { %288 = vmatmul.mubr.msk.f32.vlgmr.msra.gmra.mxu0 %vm34_vm0, %v22_v5  ;;  %294 = vmatprep.subr.mxu1 %v145_v8  ;;  %p328_p3 = por %p327_p2, %p326_p1 }
   0xb   :  { %295 = vmatpush3.msra.mxu1 %v145_v8 }
   0xc   :  { %296 = vmatprep.subr.mxu1 %v144_v9  ;;  %p329_p4 = pnand %p328_p3, %p322_p0 }
   0xd   :  { %297 = vmatpush3.msra.mxu1 %v144_v9 }
   0xe   :  { %298 = vmatprep.subr.mxu1 %v143_v10 }
   0xf   :  { %299 = vmatpush3.msra.mxu1 %v143_v10 }
  0x10   :  { %300 = vmatprep.subr.mxu1 %v142_v11 }
  0x11   :  { %301 = vmatpush3.msra.mxu1 %v142_v11 }
  0x12   :  { %302 = vmatprep.subr.mxu1 %v141_v12 }
  0x13   :  { %303 = vmatpush3.msra.mxu1 %v141_v12 }
  0x14   :  { %304 = vmatprep.subr.mxu1 %v140_v13 }
  0x15   :  { %305 = vmatpush3.msra.mxu1 %v140_v13 }
  0xca   :  { %v289_v14 = vpop.f32.mrf.mxu0 }
  0xcb   :  { %v113_v18 = vadd.f32 %v289_v14, %v255_v15 }
  0xcc   :  { %v107_v16 = vpop.f32.mrf.mxu0 }
  0xcd   :  { %v108_v17 = vadd.f32 %v255_v15, %v107_v16  ;;  %v259_v20 = vmul.f32 -1.442695, %v113_v18 }
  0xcf   :  { %132 = vrot.lane.b32.xlu0 %v108_v17, %s343_s21  ;;  %v258_v19 = vmul.f32 -1.442695, %v108_v17 }
  0xd1   :  { %313 = vpow2.f32 %v258_v19 }
  0xd2   :  { %315 = vpow2.f32 %v259_v20 }
  0xd3   :  { %134 = vrot.lane.b32.xlu0 %v113_v18, %s343_s21 }
  0xde   :  { %v314_v21 = vpop.eup %313 }
  0xdf   :  { %v122_v22 = vadd.f32 1.0, %v314_v21  ;;  %v316_v23 = vpop.eup %315 }
  0xe0   :  { %v123_v24 = vadd.f32 1.0, %v316_v23 }
  0xe1   :  { %317 = vrcp.f32 %v122_v22 }
  0xe2   :  { %319 = vrcp.f32 %v123_v24 }
  0xee   :  { %v318_v25 = vpop.eup %317 }
  0xef   :  { %v128_v26 = vmul.f32 %v318_v25, %v108_v17  ;;  %v320_v27 = vpop.eup %319 }
  0xf0   :  { %v129_v30 = vmul.f32 %v320_v27, %v113_v18 }
 0x141   :  { %v133_v28 = vpop.permute.xlu0 %132 }
 0x142   :  { %v138_v29 = vmul.f32 %v133_v28, %v128_v26 }
 0x144   :  { %306 = vmatprep.mubr.msk.f32.mxu1 %vm155_vm1, %v138_v29 }
 0x145   :  { %v135_v31 = vpop.permute.xlu0 %134 }
 0x146   :  { %v139_v32 = vmul.f32 %v135_v31, %v129_v30 }
 0x148   :  { %307 = vmatmul.mubr.msk.f32.vlgmr.msra.gmra.mxu1 %vm155_vm1, %v139_v32 }
 0x208   :  { %v308_v34 = vpop.f32.mrf.mxu1 }
 0x209   :  { %v234_v35 = vadd.f32 %v308_v34, %v260_v33 }
 0x20a   :  { %v228_v36 = vpop.f32.mrf.mxu1 }
 0x20b   :  { %238 = vst.msk [vmem:[#allocation2 + $0x8] sm:$0xff] %vm34_vm0, %v234_v35  ;;  %v229_v37 = vadd.f32 %v260_v33, %v228_v36 }
 0x20d   :  { %237 = vst.msk [vmem:[#allocation2] sm:$0xff] %vm34_vm0, %v229_v37 }
 0x20e   :  { %332 = shalt.err (!%p329_p4)
}
 0x20f   :  { %s345_s25 = smov 128   ;;  %s346_s4 = smov 8  }
 0x210   :  { %250 = dma.vmem_to_hbm [thread:$0]  %s245_s23, 256, %s437_s5, [#allocation3], %s345_s25, %s345_s25, %s346_s4  }
 0x211   :  { %341 = dma.done.wait [#allocation3], 256  }
 0x212   :  { %342 = vsyncadd [#allocation3], 4294967040 }
 0x213   :  { %254 = vsyncpa [#allocation3], 1 }

// kernel: tpu_custom_call.1
= control target key start
LH: loop header
LB: loop body
LE: loop exit
PB: predicated region body
PF: predicated region fallthrough
CT: control target
= control target key end

     0   :  { %vm34_vm0 = vcmask 261120   ;;  %s432_s0 = inlined_call_operand.vmem [shape: f32[16,32], index: 0, kind: input, shape index: {}]   ;;  %s433_s1 = inlined_call_operand.vmem [shape: f32[32,128], index: 1, kind: input, shape index: {}]   ;;  %s434_s2 = inlined_call_operand.vmem [shape: f32[1,128], index: 2, kind: input, shape index: {}]   ;;  %s435_s3 = inlined_call_operand.vmem [shape: f32[64,32], index: 3, kind: input, shape index: {}]   ;;  %s436_s4 = inlined_call_operand.vmem [shape: f32[1,32], index: 4, kind: input, shape index: {}]   ;;  %s437_s5 = inlined_call_operand.hbm [shape: f32[16,32], index: 5, kind: output, shape index: {}]  }
   0x1   :  { %v26_v0 = vld [vmem:[%s433_s1 + $0x18] sm:$0xff]  ;;  %v25_v1 = vld [vmem:[%s433_s1 + $0x10] sm:$0xff]  ;;  %v21_v2 = vld [vmem:[%s432_s0] sm:$0xff] }
   0x2   :  { %279 = vmatprep.subr.mxu0 %v26_v0  ;;  %v24_v3 = vld [vmem:[%s433_s1 + $0x8] sm:$0xff]  ;;  %287 = vmatprep.mubr.msk.f32.mxu0 %vm34_vm0, %v21_v2 }
   0x3   :  { %280 = vmatpush3.msra.mxu0 %v26_v0 }
   0x4   :  { %10 = vsyncpa [#allocation3], 0  ;;  %281 = vmatprep.subr.mxu0 %v25_v1  ;;  %v23_v4 = vld [vmem:[%s433_s1] sm:$0xff]  ;;  %v22_v5 = vld [vmem:[%s432_s0 + $0x8] sm:$0xff]  ;;  %s343_s21 = smov 64   ;;  %vm155_vm1 = vcmask 523264  }
   0x5   :  { %282 = vmatpush3.msra.mxu0 %v25_v1  ;;  %v147_v6 = vld [vmem:[%s435_s3 + $0x38] sm:$0xff]  ;;  %v146_v7 = vld [vmem:[%s435_s3 + $0x30] sm:$0xff]  ;;  %v145_v8 = vld [vmem:[%s435_s3 + $0x28] sm:$0xff]  ;;  %s344_s22 = smov [#allocation2]  }
   0x6   :  { %283 = vmatprep.subr.mxu0 %v24_v3  ;;  %290 = vmatprep.subr.mxu1 %v147_v6  ;;  %v144_v9 = vld [vmem:[%s435_s3 + $0x20] sm:$0xff]  ;;  %v143_v10 = vld [vmem:[%s435_s3 + $0x18] sm:$0xff]  ;;  %v142_v11 = vld [vmem:[%s435_s3 + $0x10] sm:$0xff]  ;;  %s244_s23 = sshll.u32 %s344_s22, 4  ;;  %s245_s23 = int_to_ptr.vmem [resolvable:$true] %s244_s23 }
   0x7   :  { %284 = vmatpush3.msra.mxu0 %v24_v3  ;;  %291 = vmatpush3.msra.mxu1 %v147_v6  ;;  %v141_v12 = vld [vmem:[%s435_s3 + $0x8] sm:$0xff]  ;;  %v140_v13 = vld [vmem:[%s435_s3] sm:$0xff]  ;;  %s321_s24 = scalar_lea.vmem %s245_s23, 256  ;;  %p326_p1 = scmp.lt.s32.totalorder %s245_s23, %s245_s23 }
   0x8   :  { %285 = vmatprep.subr.mxu0 %v23_v4  ;;  %292 = vmatprep.subr.mxu1 %v146_v7  ;;  %v255_v15 = vld [vmem:[%s434_s2] ss:$0 sm:$0xff]  ;;  %p322_p0 = scmp.ne.s32.totalorder %s245_s23, %s321_s24  ;;  %p327_p2 = scmp.lt.s32.totalorder %s321_s24, %s321_s24 }
   0x9   :  { %286 = vmatpush3.msra.mxu0 %v23_v4  ;;  %293 = vmatpush3.msra.mxu1 %v146_v7  ;;  %v260_v33 = vld [vmem:[%s436_s4] ss:$0 sm:$0xff] }
   0xa   :  { %288 = vmatmul.mubr.msk.f32.vlgmr.msra.gmra.mxu0 %vm34_vm0, %v22_v5  ;;  %294 = vmatprep.subr.mxu1 %v145_v8  ;;  %p328_p3 = por %p327_p2, %p326_p1 }
   0xb   :  { %295 = vmatpush3.msra.mxu1 %v145_v8 }
   0xc   :  { %296 = vmatprep.subr.mxu1 %v144_v9  ;;  %p329_p4 = pnand %p328_p3, %p322_p0 }
   0xd   :  { %297 = vmatpush3.msra.mxu1 %v144_v9 }
   0xe   :  { %298 = vmatprep.subr.mxu1 %v143_v10 }
   0xf   :  { %299 = vmatpush3.msra.mxu1 %v143_v10 }
  0x10   :  { %300 = vmatprep.subr.mxu1 %v142_v11 }
  0x11   :  { %301 = vmatpush3.msra.mxu1 %v142_v11 }
  0x12   :  { %302 = vmatprep.subr.mxu1 %v141_v12 }
  0x13   :  { %303 = vmatpush3.msra.mxu1 %v141_v12 }
  0x14   :  { %304 = vmatprep.subr.mxu1 %v140_v13 }
  0x15   :  { %305 = vmatpush3.msra.mxu1 %v140_v13 }
  0xca   :  { %v289_v14 = vpop.f32.mrf.mxu0 }
  0xcb   :  { %v113_v18 = vadd.f32 %v289_v14, %v255_v15 }
  0xcc   :  { %v107_v16 = vpop.f32.mrf.mxu0 }
  0xcd   :  { %v108_v17 = vadd.f32 %v255_v15, %v107_v16  ;;  %v259_v20 = vmul.f32 -1.442695, %v113_v18 }
  0xcf   :  { %132 = vrot.lane.b32.xlu0 %v108_v17, %s343_s21  ;;  %v258_v19 = vmul.f32 -1.442695, %v108_v17 }
  0xd1   :  { %313 = vpow2.f32 %v258_v19 }
  0xd2   :  { %315 = vpow2.f32 %v259_v20 }
  0xd3   :  { %134 = vrot.lane.b32.xlu0 %v113_v18, %s343_s21 }
  0xde   :  { %v314_v21 = vpop.eup %313 }
  0xdf   :  { %v122_v22 = vadd.f32 1.0, %v314_v21  ;;  %v316_v23 = vpop.eup %315 }
  0xe0   :  { %v123_v24 = vadd.f32 1.0, %v316_v23 }
  0xe1   :  { %317 = vrcp.f32 %v122_v22 }
  0xe2   :  { %319 = vrcp.f32 %v123_v24 }
  0xee   :  { %v318_v25 = vpop.eup %317 }
  0xef   :  { %v128_v26 = vmul.f32 %v318_v25, %v108_v17  ;;  %v320_v27 = vpop.eup %319 }
  0xf0   :  { %v129_v30 = vmul.f32 %v320_v27, %v113_v18 }
 0x141   :  { %v133_v28 = vpop.permute.xlu0 %132 }
 0x142   :  { %v138_v29 = vmul.f32 %v133_v28, %v128_v26 }
 0x144   :  { %306 = vmatprep.mubr.msk.f32.mxu1 %vm155_vm1, %v138_v29 }
 0x145   :  { %v135_v31 = vpop.permute.xlu0 %134 }
 0x146   :  { %v139_v32 = vmul.f32 %v135_v31, %v129_v30 }
 0x148   :  { %307 = vmatmul.mubr.msk.f32.vlgmr.msra.gmra.mxu1 %vm155_vm1, %v139_v32 }
 0x208   :  { %v308_v34 = vpop.f32.mrf.mxu1 }
 0x209   :  { %v234_v35 = vadd.f32 %v308_v34, %v260_v33 }
 0x20a   :  { %v228_v36 = vpop.f32.mrf.mxu1 }
 0x20b   :  { %238 = vst.msk [vmem:[#allocation2 + $0x8] sm:$0xff] %vm34_vm0, %v234_v35  ;;  %v229_v37 = vadd.f32 %v260_v33, %v228_v36 }
 0x20d   :  { %237 = vst.msk [vmem:[#allocation2] sm:$0xff] %vm34_vm0, %v229_v37 }
 0x20e   :  { %332 = shalt.err (!%p329_p4)
}
 0x20f   :  { %s345_s25 = smov 128   ;;  %s346_s4 = smov 8  }
 0x210   :  { %250 = dma.vmem_to_hbm [thread:$0]  %s245_s23, 256, %s437_s5, [#allocation3], %s345_s25, %s345_s25, %s346_s4  }
 0x211   :  { %341 = dma.done.wait [#allocation3], 256  }
 0x212   :  { %342 = vsyncadd [#allocation3], 4294967040 }
 0x213   :  { %254 = vsyncpa [#allocation3], 1 }

</bundles_post_ra>
